<compile_context>
chip_gen: v5e
topology: v5e:2x2
jax: 0.10.0
libtpu: 0.0.40
codegen_flags: <defaults>
</compile_context>

<pallas_src>
import functools

import jax
import jax.numpy as jnp
from jax import lax
from jax.experimental import pallas as pl
from jax.experimental.pallas import tpu as pltpu


def _fused_cnn_kernel(x_ref, w1_ref, b1_ref, w2_ref, b2_ref,
                      h_ref, y_ref, xp_s, hp_s, *, B, H, W, Cin, Cmid, Cout):
    """Fused conv3x3 -> ReLU -> conv3x3 (SAME) for a block of B images.

    x_ref  : (B, H, W*Cin)          lane-dense input rows
    w1_ref : (3, W*Cin,  W*Cmid)    bf16 banded weights, conv1 (per kh tap)
    b1_ref : (1, W*Cmid)            f32 bias, pre-tiled over W
    w2_ref : (3, W*Cmid, W*Cout)    bf16 banded weights, conv2
    b2_ref : (1, W*Cout)            f32 bias, pre-tiled over W
    h_ref  : (B, H, W*Cmid)         hooked-feature output (lane-dense)
    y_ref  : (B, H, W*Cout)         final output (lane-dense)
    xp_s   : VMEM (B*(H+2), W*Cin)  row-padded conv1 slab scratch
    hp_s   : VMEM (B*(H+2), W*Cmid) row-padded conv2 slab scratch
    """
    f32, bf16 = jnp.float32, jnp.bfloat16
    HP = H + 2
    M = B * HP - 2                        # matmul M rows (incl. junk seam rows)
    Kin, Kmid = W * Cin, W * Cmid

    # ---- stage conv1 input slab --------------------------------------------
    # Every scratch cell read this step is written this step (2 zero pad rows
    # + H data rows per image), so the grid axis stays megacore-safe.
    zrow_in = jnp.zeros((1, Kin), f32)
    for b in range(B):                    # static loop, static offsets
        base = b * HP
        xp_s[base:base + 1, :] = zrow_in                   # top pad row
        xp_s[base + 1:base + 1 + H, :] = x_ref[b]          # image rows
        xp_s[base + H + 1:base + H + 2, :] = zrow_in       # bottom pad row

    # ---- conv1: 3 MXU pushes over the whole block --------------------------
    lhs1 = xp_s[...].astype(bf16)         # ONE whole-scratch f32->bf16 cast
    h = b1_ref[...].astype(f32)           # bias broadcasts into the accumulator
    for kh in range(3):
        h = h + jnp.dot(lhs1[kh:kh + M, :], w1_ref[kh],
                        preferred_element_type=f32)
    h = jnp.maximum(h, 0.0)               # (M, W*Cmid), junk seam rows included

    # ---- hooked feature out + conv2 staging (h never leaves VMEM) ----------
    zrow_mid = jnp.zeros((1, Kmid), f32)
    for b in range(B):
        base = b * HP
        hb = h[base:base + H, :]                            # valid rows only
        h_ref[b] = hb.astype(h_ref.dtype)                   # 128-lane store
        hp_s[base:base + 1, :] = zrow_mid
        hp_s[base + 1:base + 1 + H, :] = hb
        hp_s[base + H + 1:base + H + 2, :] = zrow_mid

    # ---- conv2 ---------------------------------------------------------------
    lhs2 = hp_s[...].astype(bf16)
    y = b2_ref[...].astype(f32)
    for kh in range(3):
        y = y + jnp.dot(lhs2[kh:kh + M, :], w2_ref[kh],
                        preferred_element_type=f32)
    for b in range(B):
        y_ref[b] = y[b * HP:b * HP + H, :].astype(y_ref.dtype)


def _fused_base_model(x2d, B1, b1t, B2, b2t, *, H, W, Cin, Cmid, Cout,
                      block_images=8):
    """Run the fused CNN kernel over the batch.  Returns (h2d, y2d)."""
    N = x2d.shape[0]

    # Images per grid step: as many as the target (fills MXU rows, amortizes
    # per-step overhead), but keep >= 2 grid steps when N >= 2 so v7x's two
    # TensorCores can both be used via dimension_semantics=("parallel",).
    B = min(N, block_images)
    steps = -(-N // B)
    if steps == 1 and N >= 2:
        steps = 2
        B = -(-N // steps)
        steps = -(-N // B)
    Np = B * steps
    if Np != N:                           # pad batch; padded images are sliced off
        x2d = jnp.concatenate(
            [x2d, jnp.zeros((Np - N, H, W * Cin), x2d.dtype)], axis=0)

    kernel = functools.partial(_fused_cnn_kernel,
                               B=B, H=H, W=W, Cin=Cin, Cmid=Cmid, Cout=Cout)
    h2d, y2d = pl.pallas_call(
        kernel,
        out_shape=(jax.ShapeDtypeStruct((Np, H, W * Cmid), jnp.float32),
                   jax.ShapeDtypeStruct((Np, H, W * Cout), jnp.float32)),
        grid_spec=pltpu.PrefetchScalarGridSpec(
            num_scalar_prefetch=0,
            grid=(steps,),
            in_specs=[
                pl.BlockSpec((B, H, W * Cin), lambda n: (n, 0, 0)),
                pl.BlockSpec((3, W * Cin, W * Cmid), lambda n: (0, 0, 0)),
                pl.BlockSpec((1, W * Cmid), lambda n: (0, 0)),
                pl.BlockSpec((3, W * Cmid, W * Cout), lambda n: (0, 0, 0)),
                pl.BlockSpec((1, W * Cout), lambda n: (0, 0)),
            ],
            out_specs=(
                pl.BlockSpec((B, H, W * Cmid), lambda n: (n, 0, 0)),
                pl.BlockSpec((B, H, W * Cout), lambda n: (n, 0, 0)),
            ),
            scratch_shapes=[
                pltpu.VMEM((B * (H + 2), W * Cin), jnp.float32),
                pltpu.VMEM((B * (H + 2), W * Cmid), jnp.float32),
            ],
        ),
        compiler_params=pltpu.CompilerParams(
            dimension_semantics=("parallel",)),   # batch across v7x's 2 TCs
    )(x2d, B1, b1t, B2, b2t)

    if Np != N:
        h2d, y2d = h2d[:N], y2d[:N]
    return h2d, y2d


def _make_banded_weights(w_hwio, W):
    """Fold the kw shifts + channel mixing of a 3x3 SAME conv into per-kh
    banded matmul weights of shape (3, W*Cin, W*Cout):

        B[kh, w_in*Cin + c, w_out*Cout + o] = w[kh, kw, c, o],  w_in = w_out+kw-1

    Out-of-image column taps (w_in < 0 or >= W) are simply dropped, which is
    exactly zero padding — so no pad lanes are needed in the kernel scratches.
    """
    _, _, Cin, Cout = w_hwio.shape
    w_pos = jnp.arange(W)
    blocks = []
    for kh in range(3):
        Z = jnp.zeros((W, Cin, W, Cout), jnp.float32)
        for kw in range(3):
            sel = (w_pos[:, None] == (w_pos[None, :] + kw - 1)).astype(jnp.float32)
            Z = Z + sel[:, None, :, None] * w_hwio[kh, kw][None, :, None, :]
        blocks.append(Z.reshape(W * Cin, W * Cout))
    return jnp.stack(blocks, axis=0)


def init_base_model_params(key, cin=4, cmid=8, cout=8):
    """Deterministic params mimicking PyTorch Conv2d default (kaiming-uniform)."""
    k1, k2, k3, k4 = jax.random.split(key, 4)
    bound1 = 1.0 / float(jnp.sqrt(cin * 9))
    w1 = jax.random.uniform(k1, (3, 3, cin, cmid), jnp.float32, -bound1, bound1)
    b1 = jax.random.uniform(k2, (1, cmid), jnp.float32, -bound1, bound1)
    bound2 = 1.0 / float(jnp.sqrt(cmid * 9))
    w2 = jax.random.uniform(k3, (3, 3, cmid, cout), jnp.float32, -bound2, bound2)
    b2 = jax.random.uniform(k4, (1, cout), jnp.float32, -bound2, bound2)
    return (w1, b1, w2, b2)


def prepare_base_model_params(params, W):
    """One-time parameter prep, hoisted OUT of the jitted forward: banded bf16
    weights for the MXU and W-tiled f32 biases."""
    w1, b1, w2, b2 = params
    Cmid, Cout = w1.shape[-1], w2.shape[-1]
    B1 = _make_banded_weights(w1, W).astype(jnp.bfloat16)
    B2 = _make_banded_weights(w2, W).astype(jnp.bfloat16)
    b1t = jnp.tile(b1.reshape(-1), W).reshape(1, W * Cmid).astype(jnp.float32)
    b2t = jnp.tile(b2.reshape(-1), W).reshape(1, W * Cout).astype(jnp.float32)
    return (B1, b1t, B2, b2t)


@jax.jit
def tardis_wrapper_forward(x_nchw, prepared):
    """TARDISWrapper.forward(x) == self.base_model(x).

    Returns (y, h): y is the forward output, h is the first-conv activation
    that the forward hook would capture.  Input/output are NCHW (PyTorch
    convention); the kernel works on lane-dense (N, H, W*C) slabs.
    Outputs are kept f32 (the hook consumer pools them host-side).
    """
    B1, b1t, B2, b2t = prepared
    N, Cin, H, W = x_nchw.shape
    Cmid = b1t.shape[1] // W
    Cout = b2t.shape[1] // W

    # layout glue: NCHW -> channels-last lane-dense rows
    x2d = jnp.transpose(x_nchw, (0, 2, 3, 1)).reshape(N, H, W * Cin)

    h2d, y2d = _fused_base_model(x2d, B1, b1t, B2, b2t,
                                 H=H, W=W, Cin=Cin, Cmid=Cmid, Cout=Cout)

    # layout glue back to NCHW
    y = y2d.reshape(N, H, W, Cout).transpose(0, 3, 1, 2)
    h = h2d.reshape(N, H, W, Cmid).transpose(0, 3, 1, 2)
    return y, h


def _reference_forward(x_nchw, params):
    """Pure-JAX reference (lax conv, f32) for correctness checking."""
    w1, b1, w2, b2 = params
    x = jnp.transpose(x_nchw, (0, 2, 3, 1))
    dn = lax.conv_dimension_numbers(x.shape, w1.shape, ("NHWC", "HWIO", "NHWC"))
    h = lax.conv_general_dilated(x, w1, (1, 1), "SAME", dimension_numbers=dn)
    h = jnp.maximum(h + b1[0], 0.0)
    dn2 = lax.conv_dimension_numbers(h.shape, w2.shape, ("NHWC", "HWIO", "NHWC"))
    y = lax.conv_general_dilated(h, w2, (1, 1), "SAME", dimension_numbers=dn2)
    y = y + b2[0]
    return jnp.transpose(y, (0, 3, 1, 2)), jnp.transpose(h, (0, 3, 1, 2))


if __name__ == "__main__":
    key = jax.random.PRNGKey(0)
    kx, kp = jax.random.split(key)

    # small shapes consistent with the module: batch=2, channels=4, spatial=16
    params = init_base_model_params(kp, cin=4, cmid=8, cout=8)
    prepared = prepare_base_model_params(params, W=16)   # hoisted prep, runs once

    x = jax.random.normal(kx, (2, 4, 16, 16), jnp.float32)
    y, h = tardis_wrapper_forward(x, prepared)
    y = jax.block_until_ready(y)
    h = jax.block_until_ready(h)

    ref_y, ref_h = _reference_forward(x, params)
    assert y.shape == ref_y.shape == (2, 8, 16, 16)
    assert h.shape == ref_h.shape == (2, 8, 16, 16)
    # bf16 MXU operands with f32 accumulation -> a few e-3 absolute error max
    assert jnp.allclose(h, ref_h, atol=3e-2, rtol=1e-2)
    assert jnp.allclose(y, ref_y, atol=3e-2, rtol=1e-2)

    # second check: exercises the multi-image-per-step (batch-blocked M) path
    x8 = jax.random.normal(jax.random.PRNGKey(1), (8, 4, 16, 16), jnp.float32)
    y8, h8 = tardis_wrapper_forward(x8, prepared)
    y8 = jax.block_until_ready(y8)
    ref_y8, ref_h8 = _reference_forward(x8, params)
    assert jnp.allclose(h8, ref_h8, atol=3e-2, rtol=1e-2)
    assert jnp.allclose(y8, ref_y8, atol=3e-2, rtol=1e-2)

    print("KERNEL_OK")
</pallas_src>

<mosaic_0001>
module attributes {stable_mosaic.version = 11 : i64} {
  func.func @_fused_cnn_kernel(%arg0: i32, %arg1: memref<1x16x64xf32, #tpu.memory_space<vmem>>, %arg2: memref<3x64x128xbf16, #tpu.memory_space<vmem>>, %arg3: memref<1x128xf32, #tpu.memory_space<vmem>>, %arg4: memref<3x128x128xbf16, #tpu.memory_space<vmem>>, %arg5: memref<1x128xf32, #tpu.memory_space<vmem>>, %arg6: memref<1x16x128xf32, #tpu.memory_space<vmem>>, %arg7: memref<1x16x128xf32, #tpu.memory_space<vmem>>, %arg8: memref<18x64xf32, #tpu.memory_space<vmem>>, %arg9: memref<18x128xf32, #tpu.memory_space<vmem>>) attributes {dimension_semantics = [#tpu.dimension_semantics<parallel>], iteration_bounds = array<i64: 2>, scalar_prefetch = 0 : i64, scratch_operands = 2 : i64, tpu.core_type = #tpu.core_type<tc>, window_params = [{transform_indices = @transform_0, window_bounds = array<i64: 1, 16, 64>}, {pipeline_mode = #tpu.pipeline_mode<synchronous>, transform_indices = @transform_1, window_bounds = array<i64: 3, 64, 128>}, {pipeline_mode = #tpu.pipeline_mode<synchronous>, transform_indices = @transform_2, window_bounds = array<i64: 1, 128>}, {pipeline_mode = #tpu.pipeline_mode<synchronous>, transform_indices = @transform_3, window_bounds = array<i64: 3, 128, 128>}, {pipeline_mode = #tpu.pipeline_mode<synchronous>, transform_indices = @transform_4, window_bounds = array<i64: 1, 128>}, {transform_indices = @transform_5, window_bounds = array<i64: 1, 16, 128>}, {transform_indices = @transform_6, window_bounds = array<i64: 1, 16, 128>}]} {
    %cst = arith.constant 0.000000e+00 : f32
    %0 = vector.broadcast %cst : f32 to vector<1x64xf32>
    %c0 = arith.constant 0 : index
    %c0_0 = arith.constant 0 : index
    %1 = vector.load %arg8[%c0, %c0_0] : memref<18x64xf32, #tpu.memory_space<vmem>>, vector<1x64xf32>
    tpu.vector_store %arg8[%c0, %c0_0], %0 {strides = array<i32>} : memref<18x64xf32, #tpu.memory_space<vmem>>, vector<1x64xf32>,
    %c0_1 = arith.constant 0 : index
    %c0_2 = arith.constant 0 : index
    %c0_3 = arith.constant 0 : index
    %2 = vector.load %arg1[%c0_1, %c0_2, %c0_3] : memref<1x16x64xf32, #tpu.memory_space<vmem>>, vector<1x16x64xf32>
    %3 = vector.shape_cast %2 : vector<1x16x64xf32> to vector<16x64xf32>
    %c1 = arith.constant 1 : index
    %c0_4 = arith.constant 0 : index
    %4 = vector.load %arg8[%c1, %c0_4] : memref<18x64xf32, #tpu.memory_space<vmem>>, vector<16x64xf32>
    tpu.vector_store %arg8[%c1, %c0_4], %3 {strides = array<i32>} : memref<18x64xf32, #tpu.memory_space<vmem>>, vector<16x64xf32>,
    %c17 = arith.constant 17 : index
    %c0_5 = arith.constant 0 : index
    %5 = vector.load %arg8[%c17, %c0_5] : memref<18x64xf32, #tpu.memory_space<vmem>>, vector<1x64xf32>
    tpu.vector_store %arg8[%c17, %c0_5], %0 {strides = array<i32>} : memref<18x64xf32, #tpu.memory_space<vmem>>, vector<1x64xf32>,
    %c0_6 = arith.constant 0 : index
    %c0_7 = arith.constant 0 : index
    %6 = vector.load %arg8[%c0_6, %c0_7] : memref<18x64xf32, #tpu.memory_space<vmem>>, vector<18x64xf32>
    %7 = arith.truncf %6 : vector<18x64xf32> to vector<18x64xbf16>
    %c0_8 = arith.constant 0 : index
    %c0_9 = arith.constant 0 : index
    %8 = vector.load %arg3[%c0_8, %c0_9] : memref<1x128xf32, #tpu.memory_space<vmem>>, vector<1x128xf32>
    %9 = vector.extract_strided_slice %7 {offsets = [0, 0], sizes = [16, 64], strides = [1, 1]} : vector<18x64xbf16> to vector<16x64xbf16>
    %c0_10 = arith.constant 0 : index
    %c0_11 = arith.constant 0 : index
    %c0_12 = arith.constant 0 : index
    %10 = vector.load %arg2[%c0_10, %c0_11, %c0_12] : memref<3x64x128xbf16, #tpu.memory_space<vmem>>, vector<1x64x128xbf16>
    %11 = vector.shape_cast %10 : vector<1x64x128xbf16> to vector<64x128xbf16>
    %cst_13 = arith.constant dense<0.000000e+00> : vector<16x128xf32>
    %12 = tpu.matmul %9, %11, %cst_13 {dimension_numbers = #tpu.dot_dimension_numbers<[1], [0], [0], [1], [0, 0, 1, 1], [], []>} : vector<16x64xbf16>, vector<64x128xbf16>, vector<16x128xf32> -> vector<16x128xf32>
    %13 = vector.broadcast %8 : vector<1x128xf32> to vector<16x128xf32>
    %14 = arith.addf %13, %12 : vector<16x128xf32>
    %15 = vector.extract_strided_slice %7 {offsets = [1, 0], sizes = [16, 64], strides = [1, 1]} : vector<18x64xbf16> to vector<16x64xbf16>
    %c1_14 = arith.constant 1 : index
    %c0_15 = arith.constant 0 : index
    %c0_16 = arith.constant 0 : index
    %16 = vector.load %arg2[%c1_14, %c0_15, %c0_16] : memref<3x64x128xbf16, #tpu.memory_space<vmem>>, vector<1x64x128xbf16>
    %17 = vector.shape_cast %16 : vector<1x64x128xbf16> to vector<64x128xbf16>
    %cst_17 = arith.constant dense<0.000000e+00> : vector<16x128xf32>
    %18 = tpu.matmul %15, %17, %cst_17 {dimension_numbers = #tpu.dot_dimension_numbers<[1], [0], [0], [1], [0, 0, 1, 1], [], []>} : vector<16x64xbf16>, vector<64x128xbf16>, vector<16x128xf32> -> vector<16x128xf32>
    %19 = arith.addf %14, %18 : vector<16x128xf32>
    %20 = vector.extract_strided_slice %7 {offsets = [2, 0], sizes = [16, 64], strides = [1, 1]} : vector<18x64xbf16> to vector<16x64xbf16>
    %c2 = arith.constant 2 : index
    %c0_18 = arith.constant 0 : index
    %c0_19 = arith.constant 0 : index
    %21 = vector.load %arg2[%c2, %c0_18, %c0_19] : memref<3x64x128xbf16, #tpu.memory_space<vmem>>, vector<1x64x128xbf16>
    %22 = vector.shape_cast %21 : vector<1x64x128xbf16> to vector<64x128xbf16>
    %cst_20 = arith.constant dense<0.000000e+00> : vector<16x128xf32>
    %23 = tpu.matmul %20, %22, %cst_20 {dimension_numbers = #tpu.dot_dimension_numbers<[1], [0], [0], [1], [0, 0, 1, 1], [], []>} : vector<16x64xbf16>, vector<64x128xbf16>, vector<16x128xf32> -> vector<16x128xf32>
    %24 = arith.addf %19, %23 : vector<16x128xf32>
    %cst_21 = arith.constant 0.000000e+00 : f32
    %25 = vector.broadcast %cst_21 : f32 to vector<16x128xf32>
    %26 = arith.maximumf %24, %25 : vector<16x128xf32>
    %cst_22 = arith.constant 0.000000e+00 : f32
    %27 = vector.broadcast %cst_22 : f32 to vector<1x128xf32>
    %c0_23 = arith.constant 0 : index
    %c0_24 = arith.constant 0 : index
    %c0_25 = arith.constant 0 : index
    %28 = vector.load %arg6[%c0_23, %c0_24, %c0_25] : memref<1x16x128xf32, #tpu.memory_space<vmem>>, vector<1x16x128xf32>
    %29 = vector.shape_cast %28 : vector<1x16x128xf32> to vector<16x128xf32>
    %30 = vector.shape_cast %26 : vector<16x128xf32> to vector<1x16x128xf32>
    tpu.vector_store %arg6[%c0_23, %c0_24, %c0_25], %30 {strides = array<i32>} : memref<1x16x128xf32, #tpu.memory_space<vmem>>, vector<1x16x128xf32>,
    %c0_26 = arith.constant 0 : index
    %c0_27 = arith.constant 0 : index
    %31 = vector.load %arg9[%c0_26, %c0_27] : memref<18x128xf32, #tpu.memory_space<vmem>>, vector<1x128xf32>
    tpu.vector_store %arg9[%c0_26, %c0_27], %27 {strides = array<i32>} : memref<18x128xf32, #tpu.memory_space<vmem>>, vector<1x128xf32>,
    %c1_28 = arith.constant 1 : index
    %c0_29 = arith.constant 0 : index
    %32 = vector.load %arg9[%c1_28, %c0_29] : memref<18x128xf32, #tpu.memory_space<vmem>>, vector<16x128xf32>
    tpu.vector_store %arg9[%c1_28, %c0_29], %26 {strides = array<i32>} : memref<18x128xf32, #tpu.memory_space<vmem>>, vector<16x128xf32>,
    %c17_30 = arith.constant 17 : index
    %c0_31 = arith.constant 0 : index
    %33 = vector.load %arg9[%c17_30, %c0_31] : memref<18x128xf32, #tpu.memory_space<vmem>>, vector<1x128xf32>
    tpu.vector_store %arg9[%c17_30, %c0_31], %27 {strides = array<i32>} : memref<18x128xf32, #tpu.memory_space<vmem>>, vector<1x128xf32>,
    %c0_32 = arith.constant 0 : index
    %c0_33 = arith.constant 0 : index
    %34 = vector.load %arg9[%c0_32, %c0_33] : memref<18x128xf32, #tpu.memory_space<vmem>>, vector<18x128xf32>
    %35 = arith.truncf %34 : vector<18x128xf32> to vector<18x128xbf16>
    %c0_34 = arith.constant 0 : index
    %c0_35 = arith.constant 0 : index
    %36 = vector.load %arg5[%c0_34, %c0_35] : memref<1x128xf32, #tpu.memory_space<vmem>>, vector<1x128xf32>
    %37 = vector.extract_strided_slice %35 {offsets = [0, 0], sizes = [16, 128], strides = [1, 1]} : vector<18x128xbf16> to vector<16x128xbf16>
    %c0_36 = arith.constant 0 : index
    %c0_37 = arith.constant 0 : index
    %c0_38 = arith.constant 0 : index
    %38 = vector.load %arg4[%c0_36, %c0_37, %c0_38] : memref<3x128x128xbf16, #tpu.memory_space<vmem>>, vector<1x128x128xbf16>
    %39 = vector.shape_cast %38 : vector<1x128x128xbf16> to vector<128x128xbf16>
    %cst_39 = arith.constant dense<0.000000e+00> : vector<16x128xf32>
    %40 = tpu.matmul %37, %39, %cst_39 {dimension_numbers = #tpu.dot_dimension_numbers<[1], [0], [0], [1], [0, 0, 1, 1], [], []>} : vector<16x128xbf16>, vector<128x128xbf16>, vector<16x128xf32> -> vector<16x128xf32>
    %41 = vector.broadcast %36 : vector<1x128xf32> to vector<16x128xf32>
    %42 = arith.addf %41, %40 : vector<16x128xf32>
    %43 = vector.extract_strided_slice %35 {offsets = [1, 0], sizes = [16, 128], strides = [1, 1]} : vector<18x128xbf16> to vector<16x128xbf16>
    %c1_40 = arith.constant 1 : index
    %c0_41 = arith.constant 0 : index
    %c0_42 = arith.constant 0 : index
    %44 = vector.load %arg4[%c1_40, %c0_41, %c0_42] : memref<3x128x128xbf16, #tpu.memory_space<vmem>>, vector<1x128x128xbf16>
    %45 = vector.shape_cast %44 : vector<1x128x128xbf16> to vector<128x128xbf16>
    %cst_43 = arith.constant dense<0.000000e+00> : vector<16x128xf32>
    %46 = tpu.matmul %43, %45, %cst_43 {dimension_numbers = #tpu.dot_dimension_numbers<[1], [0], [0], [1], [0, 0, 1, 1], [], []>} : vector<16x128xbf16>, vector<128x128xbf16>, vector<16x128xf32> -> vector<16x128xf32>
    %47 = arith.addf %42, %46 : vector<16x128xf32>
    %48 = vector.extract_strided_slice %35 {offsets = [2, 0], sizes = [16, 128], strides = [1, 1]} : vector<18x128xbf16> to vector<16x128xbf16>
    %c2_44 = arith.constant 2 : index
    %c0_45 = arith.constant 0 : index
    %c0_46 = arith.constant 0 : index
    %49 = vector.load %arg4[%c2_44, %c0_45, %c0_46] : memref<3x128x128xbf16, #tpu.memory_space<vmem>>, vector<1x128x128xbf16>
    %50 = vector.shape_cast %49 : vector<1x128x128xbf16> to vector<128x128xbf16>
    %cst_47 = arith.constant dense<0.000000e+00> : vector<16x128xf32>
    %51 = tpu.matmul %48, %50, %cst_47 {dimension_numbers = #tpu.dot_dimension_numbers<[1], [0], [0], [1], [0, 0, 1, 1], [], []>} : vector<16x128xbf16>, vector<128x128xbf16>, vector<16x128xf32> -> vector<16x128xf32>
    %52 = arith.addf %47, %51 : vector<16x128xf32>
    %c0_48 = arith.constant 0 : index
    %c0_49 = arith.constant 0 : index
    %c0_50 = arith.constant 0 : index
    %53 = vector.load %arg7[%c0_48, %c0_49, %c0_50] : memref<1x16x128xf32, #tpu.memory_space<vmem>>, vector<1x16x128xf32>
    %54 = vector.shape_cast %53 : vector<1x16x128xf32> to vector<16x128xf32>
    %55 = vector.shape_cast %52 : vector<16x128xf32> to vector<1x16x128xf32>
    tpu.vector_store %arg7[%c0_48, %c0_49, %c0_50], %55 {strides = array<i32>} : memref<1x16x128xf32, #tpu.memory_space<vmem>>, vector<1x16x128xf32>,
    return
  }
  func.func @transform_0(%arg0: i32) -> (i32, i32, i32) {
    %c0_i32 = arith.constant 0 : i32
    %c0_i32_0 = arith.constant 0 : i32
    %c0_i32_1 = arith.constant 0 : i32
    return %arg0, %c0_i32, %c0_i32_0 : i32, i32, i32
  }
  func.func @transform_1(%arg0: i32) -> (i32, i32, i32) {
    %c0_i32 = arith.constant 0 : i32
    %c0_i32_0 = arith.constant 0 : i32
    %c0_i32_1 = arith.constant 0 : i32
    %c0_i32_2 = arith.constant 0 : i32
    return %c0_i32, %c0_i32_0, %c0_i32_1 : i32, i32, i32
  }
  func.func @transform_2(%arg0: i32) -> (i32, i32) {
    %c0_i32 = arith.constant 0 : i32
    %c0_i32_0 = arith.constant 0 : i32
    %c0_i32_1 = arith.constant 0 : i32
    return %c0_i32, %c0_i32_0 : i32, i32
  }
  func.func @transform_3(%arg0: i32) -> (i32, i32, i32) {
    %c0_i32 = arith.constant 0 : i32
    %c0_i32_0 = arith.constant 0 : i32
    %c0_i32_1 = arith.constant 0 : i32
    %c0_i32_2 = arith.constant 0 : i32
    return %c0_i32, %c0_i32_0, %c0_i32_1 : i32, i32, i32
  }
  func.func @transform_4(%arg0: i32) -> (i32, i32) {
    %c0_i32 = arith.constant 0 : i32
    %c0_i32_0 = arith.constant 0 : i32
    %c0_i32_1 = arith.constant 0 : i32
    return %c0_i32, %c0_i32_0 : i32, i32
  }
  func.func @transform_5(%arg0: i32) -> (i32, i32, i32) {
    %c0_i32 = arith.constant 0 : i32
    %c0_i32_0 = arith.constant 0 : i32
    %c0_i32_1 = arith.constant 0 : i32
    return %arg0, %c0_i32, %c0_i32_0 : i32, i32, i32
  }
  func.func @transform_6(%arg0: i32) -> (i32, i32, i32) {
    %c0_i32 = arith.constant 0 : i32
    %c0_i32_0 = arith.constant 0 : i32
    %c0_i32_1 = arith.constant 0 : i32
    return %arg0, %c0_i32, %c0_i32_0 : i32, i32, i32
  }
}

</mosaic_0001>

<bundles_post_ra>
// kernel: tardis_wrapper_forward.1
= control target key start
LH: loop header
LB: loop body
LE: loop exit
PB: predicated region body
PF: predicated region fallthrough
CT: control target
= control target key end

     0   :  { %s1141_s21 = smov 0   ;;  %s1289_s0 = inlined_call_operand.vmem [shape: f32[2,16,64], index: 0, kind: input, shape index: {}]   ;;  %s1290_s1 = inlined_call_operand.vmem [shape: bf16[3,64,128], index: 1, kind: input, shape index: {}]   ;;  %s1291_s2 = inlined_call_operand.vmem [shape: f32[1,128], index: 2, kind: input, shape index: {}]   ;;  %s1292_s3 = inlined_call_operand.vmem [shape: bf16[3,128,128], index: 3, kind: input, shape index: {}]   ;;  %s1293_s4 = inlined_call_operand.vmem [shape: f32[1,128], index: 4, kind: input, shape index: {}]   ;;  %s1294_s5 = inlined_call_operand.vmem [shape: f32[2,16,128], index: 5, kind: output, shape index: {0}]   ;;  %s1295_s6 = inlined_call_operand.vmem [shape: f32[2,16,128], index: 6, kind: output, shape index: {1}]  }
   0x1 LB: > { %s839_s22 = sadd.s32 4294967295, %s1103_s21   ;;  %p843_p0 = scmp.ge.s32.totalorder %s1103_s21, 1  ;;  %s1103_s21 = sphi %s1141_s21, %s17_s21  }
   0x2   : > { %p215_p1 = scmp.lt.s32.totalorder %s1103_s21, 3 }
   0x4   : > { %p216_p2 = pnand %p843_p0, %p215_p1 }
   0x5   : > { %p250_p3 = scmp.lt.s32.totalorder (!%p216_p2), %s839_s22, 1 }
   0x6   : > { %219 = sbr.rel (%p216_p2) target bundleno = 353 (0x161), region = 40 }
   0xb   : > { %v1053_v0 = vld [vmem:[%s1290_s1 + $0x18] sm:$0xff]  ;;  %vm266_vm0 = vcmask 516096   ;;  %v1105_v2 = vmov 0.0   ;;  %v1052_v3 = vld [vmem:[%s1290_s1 + $0x10] sm:$0xff]  ;;  %s1297_s22 = smov (!%p250_p3, %s839_s22), 1  ;;  %vm270_vm1 = vcmask 523264  }
   0xc   : > { %v1057_v1 = vld [vmem:[%s1290_s1 + $0x38] sm:$0xff]  ;;  %267 = vst.msk [vmem:[#allocation2] sm:$0x1] %vm266_vm0, %v1105_v2  ;;  %325 = vmatpush.bf16.msra.mxu2 %v1053_v0  ;;  %v1056_v4 = vld [vmem:[%s1290_s1 + $0x30] sm:$0xff]  ;;  %s1161_s7 = sshll.u32 %s1297_s22, 4  ;;  %v1051_v5 = vld [vmem:[%s1290_s1 + $0x8] sm:$0xff] }
   0xd   : > { %273 = vst.msk [vmem:[#allocation2 + $0x11] sm:$0x1] %vm266_vm0, %v1105_v2  ;;  %395 = vmatpush.bf16.msra.mxu1 %v1057_v1  ;;  %s254_s10 = scalar_lea.vmem %s1289_s0, %s1161_s7  ;;  %v1055_v8 = vld [vmem:[%s1290_s1 + $0x28] sm:$0xff]  ;;  %v1050_v9 = vld [vmem:[%s1290_s1] sm:$0xff]  ;;  %v1061_v10 = vld [vmem:[%s1290_s1 + $0x58] sm:$0xff]  ;;  %vm416_vm3 = vcmask 1046528   ;;  %s259_s13 = scalar_lea.vmem %s1294_s5, %s1161_s7 }
   0xe   : > { %467 = vst [vmem:[#allocation3] sm:$0x1] %v1105_v2  ;;  %v268_v6 = vld [vmem:[%s254_s10] sm:$0xff]  ;;  %v269_v7 = vld [vmem:[%s254_s10 + $0x8] sm:$0xff]  ;;  %v1060_v15 = vld [vmem:[%s1290_s1 + $0x50] sm:$0xff]  ;;  %s264_s18 = scalar_lea.vmem %s1295_s6, %s1161_s7 }
   0xf   : > { %470 = vst [vmem:[#allocation3 + $0x11] sm:$0x1] %v1105_v2  ;;  %v1054_v11 = vld [vmem:[%s1290_s1 + $0x20] sm:$0xff]  ;;  %v1059_v22 = vld [vmem:[%s1290_s1 + $0x48] sm:$0xff]  ;;  %vm352_vm2 = vsmask.f32 7424 }
  0x10   : > { %326 = vmatpush.bf16.msra.mxu2 %v1052_v3  ;;  %271 = vst.msk [vmem:[#allocation2 + $0x1] sm:$0xff] %vm270_vm1, %v268_v6  ;;  %v1058_v28 = vld [vmem:[%s1290_s1 + $0x40] sm:$0xff]  ;;  %v1069_v36 = vld [vmem:[%s1292_s3 + $0x38] sm:$0xff]  ;;  %v1068_v38 = vld [vmem:[%s1292_s3 + $0x30] sm:$0xff] }
  0x11   : > { %396 = vmatpush.bf16.msra.mxu1 %v1056_v4  ;;  %272 = vst.msk [vmem:[#allocation2 + $0x9] sm:$0xff] %vm270_vm1, %v269_v7  ;;  %v1085_v37 = vld [vmem:[%s1292_s3 + $0xb8] sm:$0xff]  ;;  %548 = vmatpush.bf16.msra.mxu3 %v1069_v36  ;;  %v1084_v40 = vld [vmem:[%s1292_s3 + $0xb0] sm:$0xff]  ;;  %v1067_v41 = vld [vmem:[%s1292_s3 + $0x28] sm:$0xff] }
  0x12   : > { %v1077_v39 = vld [vmem:[%s1292_s3 + $0x78] sm:$0xff]  ;;  %v1076_v42 = vld [vmem:[%s1292_s3 + $0x70] sm:$0xff]  ;;  %v1083_v43 = vld [vmem:[%s1292_s3 + $0xa8] sm:$0xff] }
  0x13   : > { %648 = vmatpush.bf16.msra.mxu0 %v1077_v39  ;;  %v1066_v44 = vld [vmem:[%s1292_s3 + $0x20] sm:$0xff]  ;;  %v1075_v45 = vld [vmem:[%s1292_s3 + $0x68] sm:$0xff]  ;;  %v1065_v47 = vld [vmem:[%s1292_s3 + $0x18] sm:$0xff] }
  0x14   : > { %327 = vmatpush.bf16.msra.mxu2 %v1051_v5  ;;  %v1082_v46 = vld [vmem:[%s1292_s3 + $0xa0] sm:$0xff]  ;;  %v1081_v49 = vld [vmem:[%s1292_s3 + $0x98] sm:$0xff]  ;;  %v1064_v50 = vld [vmem:[%s1292_s3 + $0x10] sm:$0xff] }
  0x15   : > { %397 = vmatpush.bf16.msra.mxu1 %v1055_v8  ;;  %549 = vmatpush.bf16.msra.mxu3 %v1068_v38  ;;  %v1074_v48 = vld [vmem:[%s1292_s3 + $0x60] sm:$0xff]  ;;  %v1073_v52 = vld [vmem:[%s1292_s3 + $0x58] sm:$0xff]  ;;  %v1080_v53 = vld [vmem:[%s1292_s3 + $0x90] sm:$0xff] }
  0x16   : > { %v1063_v54 = vld [vmem:[%s1292_s3 + $0x8] sm:$0xff]  ;;  %v1072_v55 = vld [vmem:[%s1292_s3 + $0x50] sm:$0xff]  ;;  %v1062_v57 = vld [vmem:[%s1292_s3] sm:$0xff] }
  0x17   : > { %v274_v12 = vld [vmem:[#allocation2] sm:$0xff]  ;;  %649 = vmatpush.bf16.msra.mxu0 %v1076_v42  ;;  %v1079_v56 = vld [vmem:[%s1292_s3 + $0x88] sm:$0xff] }
  0x18   : > { %328 = vmatpush.bf16.msra.mxu2 %v1050_v9  ;;  %v275_v13 = vld [vmem:[#allocation2 + $0x8] sm:$0xff]  ;;  %v277_v14 = vpack.c.bf16 %v274_v12, %v274_v12  ;;  %v276_v16 = vld [vmem:[#allocation2 + $0x10] sm:$0x3]  ;;  %v1095_v58 = vld [vmem:[%s1291_s2] ss:$0 sm:$0xff] }
  0x19   : > { %398 = vmatpush.bf16.msra.mxu1 %v1054_v11  ;;  %v278_v17 = vpack.c.bf16 %v275_v13, %v275_v13  ;;  %v279_v18 = vpack.c.bf16 %v276_v16, %v276_v16  ;;  %550 = vmatpush.bf16.msra.mxu3 %v1067_v41  ;;  %v1071_v61 = vld [vmem:[%s1292_s3 + $0x48] sm:$0xff]  ;;  %v1078_v62 = vld [vmem:[%s1292_s3 + $0x80] sm:$0xff] }
  0x1a   : > { %v291_v19 = vunpack.c.l.b16 %v277_v14  ;;  %v1070_v0 = vld [vmem:[%s1292_s3 + $0x40] sm:$0xff] }
  0x1b   : > { %v292_v20 = vunpack.c.l.b16 %v278_v17  ;;  %v350_v21 = vunpack.c.l.b16 %v279_v18  ;;  %650 = vmatpush.bf16.msra.mxu0 %v1075_v45 }
  0x1c   : > { %451 = vmatpush.bf16.msrb.mxu2 %v1061_v10 }
  0x1d   : > { %v293_v23 = vpack.c.b16 %v292_v20, %v291_v19  ;;  %v351_v24 = vpack.c.b16 %v350_v21, %v350_v21  ;;  %733 = vmatpush.bf16.msrb.mxu1 %v1085_v37  ;;  %551 = vmatpush.bf16.msra.mxu3 %v1066_v44 }
  0x1f   : > { %866 = vmatmul.msk.bf16.vlgmr.msra.gmra.mxu2 %vm270_vm1, %v293_v23  ;;  %v353_v25 = vshrl.u32 %v293_v23, 16  ;;  %v355_v26 = vshll.u32 %v293_v23, 16  ;;  %v360_v27 = vshll.u32 %v351_v24, 16  ;;  %v417_v33 = vrot.slane %v293_v23, 1  ;;  %651 = vmatpush.bf16.msra.mxu0 %v1074_v48 }
  0x20   : > { %452 = vmatpush.bf16.msrb.mxu2 %v1060_v15  ;;  %v418_v34 = vrot.slane %v351_v24, 1 }
  0x21   : > { %v357_v29 = vrot.slane %v355_v26, 1  ;;  %v362_v30 = vrot.slane %v360_v27, 1  ;;  %734 = vmatpush.bf16.msrb.mxu1 %v1084_v40  ;;  %552 = vmatpush.bf16.msra.mxu3 %v1065_v47 }
  0x22   : > { %v419_v35 = vsel %vm416_vm3, %v417_v33, %v418_v34 }
  0x23   : > { %v358_v31 = vor.u32 %v357_v29, %v353_v25  ;;  %652 = vmatpush.bf16.msra.mxu0 %v1073_v52 }
  0x24   : > { %453 = vmatpush.bf16.msrb.mxu2 %v1059_v22 }
  0x25   : > { %v363_v32 = vsel %vm352_vm2, %v358_v31, %v362_v30  ;;  %735 = vmatpush.bf16.msrb.mxu1 %v1083_v43  ;;  %553 = vmatpush.bf16.msra.mxu3 %v1064_v50 }
  0x26   : > { %891 = vmatmul.msk.bf16.vlgmr.msra.gmra.mxu1 %vm270_vm1, %v363_v32  ;;  %v1096_v32 = vld [vmem:[%s1293_s4] ss:$0 sm:$0xff] }
  0x27   : > { %653 = vmatpush.bf16.msra.mxu0 %v1072_v55 }
  0x28   : > { %454 = vmatpush.bf16.msrb.mxu2 %v1058_v28 }
  0x29   : > { %736 = vmatpush.bf16.msrb.mxu1 %v1082_v46  ;;  %554 = vmatpush.bf16.msra.mxu3 %v1063_v54 }
  0x2b   : > { %654 = vmatpush.bf16.msra.mxu0 %v1071_v61 }
  0x2d   : > { %737 = vmatpush.bf16.msrb.mxu1 %v1081_v49  ;;  %555 = vmatpush.bf16.msra.mxu3 %v1062_v57 }
  0x2f   : > { %916 = vmatmul.msk.bf16.vlgmr.msrb.gmra.mxu2 %vm270_vm1, %v419_v35  ;;  %655 = vmatpush.bf16.msra.mxu0 %v1070_v0 }
  0x31   : > { %738 = vmatpush.bf16.msrb.mxu1 %v1080_v53 }
  0x35   : > { %739 = vmatpush.bf16.msrb.mxu1 %v1079_v56 }
  0x39   : > { %740 = vmatpush.bf16.msrb.mxu1 %v1078_v62 }
  0xa2   : > { %v330_v51 = vpop.f32.mrf.mxu2 }
  0xa3   : > { %v400_v60 = vpop.f32.mrf.mxu1  ;;  %v338_v63 = vadd.f32 %v1095_v58, %v330_v51 }
  0xa5   : > { %v405_v1 = vadd.f32 %v400_v60, %v338_v63 }
  0xaa   : > { %v332_v59 = vpop.f32.mrf.mxu2 }
  0xab   : > { %v339_v4 = vadd.f32 %v1095_v58, %v332_v59  ;;  %v402_v6 = vpop.f32.mrf.mxu1 }
  0xad   : > { %v406_v7 = vadd.f32 %v402_v6, %v339_v4 }
  0xb2   : > { %v456_v2 = vpop.f32.mrf.mxu2 }
  0xb3   : > { %v461_v3 = vadd.f32 %v456_v2, %v405_v1 }
  0xb5   : > { %v463_v5 = vmax.f32 %v461_v3, 0.0 }
  0xb7   : > { %465 = vst [vmem:[%s259_s13] sm:$0xff] %v463_v5 }
  0xb8   : > { %468 = vst [vmem:[#allocation3 + $0x1] sm:$0xff] %v463_v5 }
  0xba   : > { %v458_v8 = vpop.f32.mrf.mxu2 }
  0xbb   : > { %v462_v9 = vadd.f32 %v458_v8, %v406_v7 }
  0xbd   : > { %v464_v10 = vmax.f32 %v462_v9, 0.0 }
  0xbf   : > { %466 = vst [vmem:[%s259_s13 + $0x8] sm:$0xff] %v464_v10  ;;  %v471_v11 = vld [vmem:[#allocation3] sm:$0xff] }
  0xc0   : > { %469 = vst [vmem:[#allocation3 + $0x9] sm:$0xff] %v464_v10  ;;  %v474_v12 = vpack.c.bf16 %v471_v11, %v471_v11 }
  0xc2   : > { %v496_v17 = vunpack.c.l.b16 %v474_v12 }
  0xc7   : > { %v472_v13 = vld [vmem:[#allocation3 + $0x8] sm:$0xff]  ;;  %v473_v14 = vld [vmem:[#allocation3 + $0x10] sm:$0x3] }
  0xc8   : > { %v475_v15 = vpack.c.bf16 %v472_v13, %v472_v13  ;;  %v476_v16 = vpack.c.bf16 %v473_v14, %v473_v14 }
  0xca   : > { %v497_v18 = vunpack.c.l.b16 %v475_v15  ;;  %v585_v19 = vunpack.c.l.b16 %v476_v16 }
  0xcc   : > { %v498_v20 = vpack.c.b16 %v497_v18, %v496_v17  ;;  %v586_v21 = vpack.c.b16 %v585_v19, %v585_v19 }
  0xce   : > { %556 = vmatmul.bf16.vlgmr.msra.gmra.mxu3 %v498_v20  ;;  %v681_v22 = vrot.slane %v498_v20, 1  ;;  %v682_v23 = vrot.slane %v586_v21, 1  ;;  %v590_v24 = vshll.u32 %v498_v20, 16  ;;  %v595_v25 = vshll.u32 %v586_v21, 16 }
  0xcf   : > { %v588_v27 = vshrl.u32 %v498_v20, 16 }
  0xd0   : > { %v683_v26 = vsel %vm416_vm3, %v681_v22, %v682_v23  ;;  %v592_v28 = vrot.slane %v590_v24, 1  ;;  %v597_v30 = vrot.slane %v595_v25, 1 }
  0xd1   : > { %741 = vmatmul.bf16.vlgmr.msrb.gmra.mxu1 %v683_v26 }
  0xd2   : > { %v593_v29 = vor.u32 %v592_v28, %v588_v27 }
  0xd4   : > { %v598_v31 = vsel %vm352_vm2, %v593_v29, %v597_v30 }
  0xd5   : > { %656 = vmatmul.bf16.vlgmr.msra.gmra.mxu0 %v598_v31 }
 0x14e   : > { %v742_v36 = vpop.f32.mrf.mxu1 }
 0x151   : > { %v557_v33 = vpop.f32.mrf.mxu3 }
 0x152   : > { %v565_v34 = vadd.f32 %v1096_v32, %v557_v33  ;;  %v657_v35 = vpop.f32.mrf.mxu0 }
 0x154   : > { %v662_v37 = vadd.f32 %v657_v35, %v565_v34 }
 0x156   : > { %v747_v38 = vadd.f32 %v742_v36, %v662_v37  ;;  %v744_v43 = vpop.f32.mrf.mxu1 }
 0x158   : > { %749 = vst [vmem:[%s264_s18] sm:$0xff] %v747_v38 }
 0x159   : > { %v559_v39 = vpop.f32.mrf.mxu3 }
 0x15a   : > { %v566_v40 = vadd.f32 %v1096_v32, %v559_v39  ;;  %v659_v41 = vpop.f32.mrf.mxu0 }
 0x15c   : > { %v663_v42 = vadd.f32 %v659_v41, %v566_v40 }
 0x15e   : > { %v748_v44 = vadd.f32 %v744_v43, %v663_v42 }
 0x160   : > { %750 = vst [vmem:[%s264_s18 + $0x8] sm:$0xff] %v748_v44 }
 0x161 PF: > { %s17_s21 = sadd.s32 1, %s1103_s21  }
 0x162   : > { %p14_p4 = scmp.ge.s32.totalorder %s17_s21, 4  }
 0x164   :  { %16 = sbr.rel (!%p14_p4) target bundleno = 1 (0x1), region = 86 }

</bundles_post_ra>
